<compile_context>
chip_gen: v7x
topology: tpu7x:2x2x1
jax: 0.10.0
libtpu: 0.0.40
codegen_flags: <defaults>
</compile_context>

<pallas_src>
import jax
import jax.numpy as jnp
from jax.experimental import pallas as pl
from jax.experimental.pallas import tpu as pltpu

SUBLANE = 8        # second-to-last dim tiling unit (f32)
BF16_PACK = 16     # bf16 sublane pack -> K alignment for bf16 MXU operands


def _round_up(n, m):
    return ((n + m - 1) // m) * m


def _classifier_kernel(x_ref, w1_ref, b1_ref, w2_ref, b2_ref, w3_ref, b3_ref,
                       out_ref):
    # Matmuls on bf16 operands (MXU) with f32 accumulation; elementwise in f32.
    x = x_ref[...].astype(jnp.bfloat16)          # in-kernel cast: free VPU filler

    # fc1 + ReLU   (dropout p=0.2, training=False -> identity)
    h1 = jnp.dot(x, w1_ref[...], preferred_element_type=jnp.float32)
    h1 = jnp.maximum(h1 + b1_ref[...], 0.0)

    # fc2 + ReLU   (dropout p=0.2, training=False -> identity)
    h2 = jnp.dot(h1.astype(jnp.bfloat16), w2_ref[...],
                 preferred_element_type=jnp.float32)
    h2 = jnp.maximum(h2 + b2_ref[...], 0.0)

    # fc3 + Sigmoid
    h3 = jnp.dot(h2.astype(jnp.bfloat16), w3_ref[...],
                 preferred_element_type=jnp.float32)
    h3 = h3 + b3_ref[...]

    # sigmoid: exp (EUP) + approximate reciprocal (EUP) -> VALU stays free.
    out_ref[...] = pl.reciprocal(1.0 + jnp.exp(-h3), approx=True)


def classifier_forward(x, w1, b1, w2, b2, w3, b3, *, tile_b=1024):
    """x: (B, input_dim) f32. Weights: (in, out) f32. Biases: (1, out) f32."""
    B, in_dim = x.shape
    h1_dim = w1.shape[1]
    h2_dim = w2.shape[1]
    out_dim = w3.shape[1]

    # --- batch tiling --------------------------------------------------------
    # Multiple of SUBLANE (Mosaic block rule), no bigger than needed for B, and
    # capped at ceil(B/2) so there are >=2 grid steps for v7x's 2 TensorCores.
    tile_b = max(SUBLANE, _round_up(min(tile_b, max(B, 1)), SUBLANE))
    if B > SUBLANE:
        tile_b = min(tile_b, _round_up(-(-B // 2), SUBLANE))
    b_p = _round_up(B, tile_b)
    grid = (b_p // tile_b,)

    # --- minimal padding -----------------------------------------------------
    # Only the contraction dim of the first matmul needs bf16-pack alignment;
    # hidden/output dims are NOT lane-padded (full-array blocks are legal and
    # the intermediates never touch HBM).
    in_p = _round_up(in_dim, BF16_PACK)

    x_p = x
    if b_p != B or in_p != in_dim:
        x_p = jnp.pad(x, ((0, b_p - B), (0, in_p - in_dim)))
    w1_p = w1 if in_p == in_dim else jnp.pad(w1, ((0, in_p - in_dim), (0, 0)))

    # Weights go to bf16 once (tiny, resident); biases stay f32 (post-accum add).
    w1_b = w1_p.astype(jnp.bfloat16)
    w2_b = w2.astype(jnp.bfloat16)
    w3_b = w3.astype(jnp.bfloat16)

    # Weights/biases are resident: same (full-array) block for every grid step.
    resident = lambda shape: pl.BlockSpec(shape, lambda i: (0, 0))

    out = pl.pallas_call(
        _classifier_kernel,
        out_shape=jax.ShapeDtypeStruct((b_p, out_dim), jnp.float32),
        grid=grid,
        in_specs=[
            pl.BlockSpec((tile_b, in_p), lambda i: (i, 0)),   # x: tiled on batch
            resident((in_p, h1_dim)),
            resident((1, h1_dim)),
            resident((h1_dim, h2_dim)),
            resident((1, h2_dim)),
            resident((h2_dim, out_dim)),
            resident((1, out_dim)),
        ],
        out_specs=pl.BlockSpec((tile_b, out_dim), lambda i: (i, 0)),
        compiler_params=pltpu.CompilerParams(
            dimension_semantics=("parallel",),      # shard batch across TCs (v7x)
            vmem_limit_bytes=32 * 1024 * 1024,      # >> actual use (<1 MiB/step);
        ),                                          # safe on v7x's 64 MiB budget
    )(x_p, w1_b, b1, w2_b, b2, w3_b, b3)

    if b_p != B:
        out = out[:B]
    return out


def init_params(key, input_dim, hidden_dim, output_dim):
    """Deterministic synthetic params. Stored as (in, out) for the kernel."""
    keys = jax.random.split(key, 6)

    def linear(kw, kb, fan_in, fan_out):
        # PyTorch default: U(-1/sqrt(fan_in), 1/sqrt(fan_in))
        bound = 1.0 / jnp.sqrt(jnp.float32(fan_in))
        w = jax.random.uniform(kw, (fan_in, fan_out), jnp.float32,
                               minval=-bound, maxval=bound)
        b = jax.random.uniform(kb, (1, fan_out), jnp.float32,
                               minval=-bound, maxval=bound)
        return w, b

    w1, b1 = linear(keys[0], keys[1], input_dim, hidden_dim)
    w2, b2 = linear(keys[2], keys[3], hidden_dim, hidden_dim // 2)
    w3, b3 = linear(keys[4], keys[5], hidden_dim // 2, output_dim)
    return w1, b1, w2, b2, w3, b3


def reference_forward(x, w1, b1, w2, b2, w3, b3):
    h1 = jnp.maximum(x @ w1 + b1, 0.0)
    h2 = jnp.maximum(h1 @ w2 + b2, 0.0)
    h3 = h2 @ w3 + b3
    return jax.nn.sigmoid(h3)


if __name__ == "__main__":
    input_dim, hidden_dim, output_dim = 16, 32, 8
    batch = 2

    key = jax.random.PRNGKey(0)
    kx, kp = jax.random.split(key)
    x = jax.random.normal(kx, (batch, input_dim), jnp.float32)
    params = init_params(kp, input_dim, hidden_dim, output_dim)

    out = jax.block_until_ready(classifier_forward(x, *params))

    ref = reference_forward(x, *params)
    assert out.shape == (batch, output_dim)
    # bf16 matmul operands + approximate reciprocal -> slightly looser tolerance
    assert jnp.allclose(out, ref, atol=2e-2, rtol=2e-2), (
        f"mismatch vs reference: max abs diff = {jnp.max(jnp.abs(out - ref))}")

    print("KERNEL_OK")
</pallas_src>

<mosaic_0001>
module attributes {stable_mosaic.version = 11 : i64} {
  func.func @_classifier_kernel(%arg0: i32, %arg1: memref<8x16xf32, #tpu.memory_space<vmem>>, %arg2: memref<16x32xbf16, #tpu.memory_space<vmem>>, %arg3: memref<1x32xf32, #tpu.memory_space<vmem>>, %arg4: memref<32x16xbf16, #tpu.memory_space<vmem>>, %arg5: memref<1x16xf32, #tpu.memory_space<vmem>>, %arg6: memref<16x8xbf16, #tpu.memory_space<vmem>>, %arg7: memref<1x8xf32, #tpu.memory_space<vmem>>, %arg8: memref<8x8xf32, #tpu.memory_space<vmem>>) attributes {dimension_semantics = [#tpu.dimension_semantics<parallel>], iteration_bounds = array<i64: 1>, scalar_prefetch = 0 : i64, scratch_operands = 0 : i64, tpu.core_type = #tpu.core_type<tc>, window_params = [{transform_indices = @transform_0, window_bounds = array<i64: 8, 16>}, {pipeline_mode = #tpu.pipeline_mode<synchronous>, transform_indices = @transform_1, window_bounds = array<i64: 16, 32>}, {pipeline_mode = #tpu.pipeline_mode<synchronous>, transform_indices = @transform_2, window_bounds = array<i64: 1, 32>}, {pipeline_mode = #tpu.pipeline_mode<synchronous>, transform_indices = @transform_3, window_bounds = array<i64: 32, 16>}, {pipeline_mode = #tpu.pipeline_mode<synchronous>, transform_indices = @transform_4, window_bounds = array<i64: 1, 16>}, {pipeline_mode = #tpu.pipeline_mode<synchronous>, transform_indices = @transform_5, window_bounds = array<i64: 16, 8>}, {pipeline_mode = #tpu.pipeline_mode<synchronous>, transform_indices = @transform_6, window_bounds = array<i64: 1, 8>}, {transform_indices = @transform_7, window_bounds = array<i64: 8, 8>}]} {
    %c0 = arith.constant 0 : index
    %c0_0 = arith.constant 0 : index
    %0 = vector.load %arg1[%c0, %c0_0] : memref<8x16xf32, #tpu.memory_space<vmem>>, vector<8x16xf32>
    %1 = arith.truncf %0 : vector<8x16xf32> to vector<8x16xbf16>
    %c0_1 = arith.constant 0 : index
    %c0_2 = arith.constant 0 : index
    %2 = vector.load %arg2[%c0_1, %c0_2] : memref<16x32xbf16, #tpu.memory_space<vmem>>, vector<16x32xbf16>
    %cst = arith.constant dense<0.000000e+00> : vector<8x32xf32>
    %3 = tpu.matmul %1, %2, %cst {dimension_numbers = #tpu.dot_dimension_numbers<[1], [0], [0], [1], [0, 0, 1, 1], [], []>} : vector<8x16xbf16>, vector<16x32xbf16>, vector<8x32xf32> -> vector<8x32xf32>
    %c0_3 = arith.constant 0 : index
    %c0_4 = arith.constant 0 : index
    %4 = vector.load %arg3[%c0_3, %c0_4] : memref<1x32xf32, #tpu.memory_space<vmem>>, vector<1x32xf32>
    %5 = vector.broadcast %4 : vector<1x32xf32> to vector<8x32xf32>
    %6 = arith.addf %3, %5 : vector<8x32xf32>
    %cst_5 = arith.constant 0.000000e+00 : f32
    %7 = vector.broadcast %cst_5 : f32 to vector<8x32xf32>
    %8 = arith.maximumf %6, %7 : vector<8x32xf32>
    %9 = arith.truncf %8 : vector<8x32xf32> to vector<8x32xbf16>
    %c0_6 = arith.constant 0 : index
    %c0_7 = arith.constant 0 : index
    %10 = vector.load %arg4[%c0_6, %c0_7] : memref<32x16xbf16, #tpu.memory_space<vmem>>, vector<32x16xbf16>
    %cst_8 = arith.constant dense<0.000000e+00> : vector<8x16xf32>
    %11 = tpu.matmul %9, %10, %cst_8 {dimension_numbers = #tpu.dot_dimension_numbers<[1], [0], [0], [1], [0, 0, 1, 1], [], []>} : vector<8x32xbf16>, vector<32x16xbf16>, vector<8x16xf32> -> vector<8x16xf32>
    %c0_9 = arith.constant 0 : index
    %c0_10 = arith.constant 0 : index
    %12 = vector.load %arg5[%c0_9, %c0_10] : memref<1x16xf32, #tpu.memory_space<vmem>>, vector<1x16xf32>
    %13 = vector.broadcast %12 : vector<1x16xf32> to vector<8x16xf32>
    %14 = arith.addf %11, %13 : vector<8x16xf32>
    %cst_11 = arith.constant 0.000000e+00 : f32
    %15 = vector.broadcast %cst_11 : f32 to vector<8x16xf32>
    %16 = arith.maximumf %14, %15 : vector<8x16xf32>
    %17 = arith.truncf %16 : vector<8x16xf32> to vector<8x16xbf16>
    %c0_12 = arith.constant 0 : index
    %c0_13 = arith.constant 0 : index
    %18 = vector.load %arg6[%c0_12, %c0_13] : memref<16x8xbf16, #tpu.memory_space<vmem>>, vector<16x8xbf16>
    %cst_14 = arith.constant dense<0.000000e+00> : vector<8x8xf32>
    %19 = tpu.matmul %17, %18, %cst_14 {dimension_numbers = #tpu.dot_dimension_numbers<[1], [0], [0], [1], [0, 0, 1, 1], [], []>} : vector<8x16xbf16>, vector<16x8xbf16>, vector<8x8xf32> -> vector<8x8xf32>
    %c0_15 = arith.constant 0 : index
    %c0_16 = arith.constant 0 : index
    %20 = vector.load %arg7[%c0_15, %c0_16] : memref<1x8xf32, #tpu.memory_space<vmem>>, vector<1x8xf32>
    %21 = vector.broadcast %20 : vector<1x8xf32> to vector<8x8xf32>
    %22 = arith.addf %19, %21 : vector<8x8xf32>
    %cst_17 = arith.constant 0.000000e+00 : f32
    %23 = vector.broadcast %cst_17 : f32 to vector<8x8xf32>
    %24 = arith.subf %23, %22 : vector<8x8xf32>
    %25 = math.exp %24 : vector<8x8xf32>
    %cst_18 = arith.constant 1.000000e+00 : f32
    %26 = vector.broadcast %cst_18 : f32 to vector<8x8xf32>
    %27 = arith.addf %26, %25 : vector<8x8xf32>
    %28 = tpu.reciprocal %27 {approx = true} : vector<8x8xf32> -> vector<8x8xf32>
    %c0_19 = arith.constant 0 : index
    %c0_20 = arith.constant 0 : index
    %29 = vector.load %arg8[%c0_19, %c0_20] : memref<8x8xf32, #tpu.memory_space<vmem>>, vector<8x8xf32>
    tpu.vector_store %arg8[%c0_19, %c0_20], %28 {strides = array<i32>} : memref<8x8xf32, #tpu.memory_space<vmem>>, vector<8x8xf32>,
    return
  }
  func.func @transform_0(%arg0: i32) -> (i32, i32) {
    %c0_i32 = arith.constant 0 : i32
    %c0_i32_0 = arith.constant 0 : i32
    return %arg0, %c0_i32 : i32, i32
  }
  func.func @transform_1(%arg0: i32) -> (i32, i32) {
    %c0_i32 = arith.constant 0 : i32
    %c0_i32_0 = arith.constant 0 : i32
    %c0_i32_1 = arith.constant 0 : i32
    return %c0_i32, %c0_i32_0 : i32, i32
  }
  func.func @transform_2(%arg0: i32) -> (i32, i32) {
    %c0_i32 = arith.constant 0 : i32
    %c0_i32_0 = arith.constant 0 : i32
    %c0_i32_1 = arith.constant 0 : i32
    return %c0_i32, %c0_i32_0 : i32, i32
  }
  func.func @transform_3(%arg0: i32) -> (i32, i32) {
    %c0_i32 = arith.constant 0 : i32
    %c0_i32_0 = arith.constant 0 : i32
    %c0_i32_1 = arith.constant 0 : i32
    return %c0_i32, %c0_i32_0 : i32, i32
  }
  func.func @transform_4(%arg0: i32) -> (i32, i32) {
    %c0_i32 = arith.constant 0 : i32
    %c0_i32_0 = arith.constant 0 : i32
    %c0_i32_1 = arith.constant 0 : i32
    return %c0_i32, %c0_i32_0 : i32, i32
  }
  func.func @transform_5(%arg0: i32) -> (i32, i32) {
    %c0_i32 = arith.constant 0 : i32
    %c0_i32_0 = arith.constant 0 : i32
    %c0_i32_1 = arith.constant 0 : i32
    return %c0_i32, %c0_i32_0 : i32, i32
  }
  func.func @transform_6(%arg0: i32) -> (i32, i32) {
    %c0_i32 = arith.constant 0 : i32
    %c0_i32_0 = arith.constant 0 : i32
    %c0_i32_1 = arith.constant 0 : i32
    return %c0_i32, %c0_i32_0 : i32, i32
  }
  func.func @transform_7(%arg0: i32) -> (i32, i32) {
    %c0_i32 = arith.constant 0 : i32
    %c0_i32_0 = arith.constant 0 : i32
    return %arg0, %c0_i32 : i32, i32
  }
}

</mosaic_0001>

<bundles_post_ra>
// kernel: tpu_custom_call.1
= control target key start
LH: loop header
LB: loop body
LE: loop exit
PB: predicated region body
PF: predicated region fallthrough
CT: control target
= control target key end

     0   :  { %v311_v1 = vmov 0.0   ;;  %vm45_vm0 = vcmask 130048   ;;  %vm312_vm1 = vmmov 0   ;;  %s392_s0 = inlined_call_operand.vmem [shape: f32[8,16], index: 0, kind: input, shape index: {}]   ;;  %s393_s1 = inlined_call_operand.vmem [shape: bf16[16,32], index: 1, kind: input, shape index: {}]   ;;  %s394_s2 = inlined_call_operand.vmem [shape: f32[1,32], index: 2, kind: input, shape index: {}]   ;;  %s395_s3 = inlined_call_operand.vmem [shape: bf16[32,16], index: 3, kind: input, shape index: {}]   ;;  %s396_s4 = inlined_call_operand.vmem [shape: f32[1,16], index: 4, kind: input, shape index: {}]   ;;  %s397_s5 = inlined_call_operand.vmem [shape: bf16[16,8], index: 5, kind: input, shape index: {}]   ;;  %s398_s6 = inlined_call_operand.vmem [shape: f32[1,8], index: 6, kind: input, shape index: {}]   ;;  %s399_s7 = inlined_call_operand.hbm [shape: f32[8,8], index: 7, kind: output, shape index: {}]  }
   0x1   :  { %v279_v0 = vld [vmem:[%s393_s1] sm:$0xff]   ;;  %256 = vmatprep.subr.bf16.mxu0 %v311_v1  ;;  %262 = vmatprep.subr.bf16.mxu1 %v311_v1 }
   0x2   :  { %v28_v2 = vld [vmem:[%s392_s0] sm:$0xff]  ;;  %257 = vmatpush3.bf16.msra.mxu0 %v279_v0  ;;  %258 = vmatprep.mubr.msk.bf16.mxu0 %vm312_vm1, %v311_v1 }
   0x3   :  { %v29_v3 = vpack.c.bf16 %v28_v2, %v28_v2  ;;  %266 = vmatprep.mubr.msk.bf16.mxu1 %vm312_vm1, %v311_v1  ;;  %270 = vmatprep.subr.bf16.mxu0 %v311_v1 }
   0x4   :  { %12 = vsyncpa [#allocation3], 0  ;;  %v280_v4 = vld [vmem:[%s395_s3] sm:$0xff]   ;;  %v281_v5 = vld [vmem:[%s395_s3 + $0x8] sm:$0xff]   ;;  %vm114_vm2 = vcmask 261120   ;;  %vm223_vm3 = vcmask 64512  }
   0x5   :  { %259 = vmatmul.mubr.msk.bf16.vlgmr.msra.gmra.mrb[0].mxu0 %vm45_vm0, %v29_v3  ;;  %263 = vmatpush3.bf16.msra.mxu1 %v280_v4  ;;  %v282_v6 = vld [vmem:[%s397_s5] sm:$0xff]  }
   0x6   :  { %272 = vmatprep.mubr.msk.bf16.mxu0 %vm312_vm1, %v311_v1  ;;  %264 = vmatprep.subr.bf16.mxu1 %v311_v1  ;;  %v239_v7 = vld [vmem:[%s394_s2] ss:$0 sm:$0xff] }
   0x7   :  { %271 = vmatpush3.bf16.msra.mxu0 %v282_v6  ;;  %v242_v15 = vld [vmem:[%s396_s4] ss:$0 sm:$0xff]  ;;  %s313_s4 = smov [#allocation2]  }
   0x8   :  { %v246_v23 = vld [vmem:[%s398_s6] ss:$0 sm:$0xff]  ;;  %s231_s12 = sshll.u32 %s313_s4, 4  ;;  %s232_s12 = int_to_ptr.vmem [resolvable:$true] %s231_s12 }
   0x9   :  { %265 = vmatpush3.bf16.msra.mxu1 %v281_v5  ;;  %s287_s13 = scalar_lea.vmem %s232_s12, 128  ;;  %p292_p1 = scmp.lt.s32.totalorder %s232_s12, %s232_s12 }
   0xa   :  { %p288_p0 = scmp.ne.s32.totalorder %s232_s12, %s287_s13  ;;  %p293_p2 = scmp.lt.s32.totalorder %s287_s13, %s287_s13 }
   0xc   :  { %p294_p3 = por %p293_p2, %p292_p1 }
   0xe   :  { %p295_p4 = pnand %p294_p3, %p288_p0 }
  0xd8   :  { %v83_v8 = vpop.f32.mrb[0].mxu0 }
  0xd9   :  { %v84_v9 = vadd.f32 %v239_v7, %v83_v8  ;;  %v260_v10 = vpop.f32.mrb[1].mxu0 }
  0xda   :  { %v86_v11 = vpop.f32.mrb[2].mxu0 }
  0xdb   :  { %v89_v12 = vmax.f32 %v84_v9, 0.0  ;;  %v261_v13 = vpop.f32.mrb[3].mxu0 }
  0xdd   :  { %v90_v14 = vpack.c.bf16 %v89_v12, %v89_v12 }
  0xdf   :  { %267 = vmatmul.mubr.msk.bf16.vlgmr.msra.gmra.mrb[0].mxu1 %vm114_vm2, %v90_v14 }
 0x1b2   :  { %v152_v16 = vpop.f32.mrb[0].mxu1 }
 0x1b3   :  { %v153_v17 = vadd.f32 %v242_v15, %v152_v16  ;;  %v268_v18 = vpop.f32.mrb[1].mxu1 }
 0x1b4   :  { %v155_v19 = vpop.f32.mrb[2].mxu1 }
 0x1b5   :  { %v158_v20 = vmax.f32 %v153_v17, 0.0  ;;  %v269_v21 = vpop.f32.mrb[3].mxu1 }
 0x1b7   :  { %v159_v22 = vpack.c.bf16 %v158_v20, %v158_v20 }
 0x1b9   :  { %273 = vmatmul.mubr.msk.bf16.vlgmr.msra.gmra.mrb[4].mxu0 %vm45_vm0, %v159_v22 }
 0x28c   :  { %v212_v24 = vpop.f32.mrb[4].mxu0 }
 0x28d   :  { %v213_v25 = vadd.f32 %v246_v23, %v212_v24  ;;  %v274_v26 = vpop.f32.mrb[5].mxu0 }
 0x28e   :  { %v215_v27 = vpop.f32.mrb[6].mxu0 }
 0x28f   :  { %v218_v28 = vsub.f32 0.0, %v213_v25  ;;  %v275_v29 = vpop.f32.mrb[7].mxu0 }
 0x291   :  { %v219_v30 = vmul.f32 1.442695, %v218_v28 }
 0x293   :  { %283 = vpow2.f32 %v219_v30 }
 0x29d   :  { %v284_v31 = vpop.eup %283 }
 0x29e   :  { %v221_v32 = vadd.f32 1.0, %v284_v31 }
 0x2a0   :  { %285 = vrcp.f32 %v221_v32 }
 0x2aa   :  { %v286_v33 = vpop.eup %285 }
 0x2ab   :  { %224 = vst.msk [vmem:[#allocation2] sm:$0xff] %vm223_vm3, %v286_v33 }
 0x2ac   :  { %298 = shalt.err (!%p295_p4)
}
 0x2ad   :  { %s299_s15 = scalar_lea.hbm %s399_s7, 128 }
 0x2ae   :  { %p300_p5 = scmp.ne.s32.totalorder %s399_s7, %s299_s15  ;;  %p303_p6 = scmp.lt.u32.totalorder %s299_s15, %s399_s7 }
 0x2b0   :  { %p305_p7 = pnand %p303_p6, %p300_p5 }
 0x2b2   :  { %308 = shalt.err (!%p305_p7)
}
 0x2b3   :  { %234 = dma.vmem_to_hbm [thread:$0]  %s232_s12, 128, %s399_s7, [#allocation3]  }
 0x2b4   :  { %309 = dma.done.wait [#allocation3], 128  }
 0x2b5   :  { %310 = vsyncadd [#allocation3], 4294967168 }
 0x2b6   :  { %238 = vsyncpa [#allocation3], 1 }

</bundles_post_ra>
